<compile_context>
chip_gen: v5e
topology: v5e:2x2
jax: 0.10.0
libtpu: 0.0.40
codegen_flags: <defaults>
</compile_context>

<pallas_src>
import functools

import jax
import jax.numpy as jnp
from jax import lax
from jax.experimental import pallas as pl
from jax.experimental.pallas import tpu as pltpu


def _round_up(x, m):
    return pl.cdiv(x, m) * m


def _combine_kernel(x_ref, k_ref, q_ref, o_ref, *, n_input, n_hop, block_rows):
    # x_ref: (n_input, TN, D)        -- all inputs for this row tile (VMEM)
    # k_ref: (n_hop, D, A)           -- full KProj, resident in VMEM
    # q_ref: (n_input, n_hop, D, A)  -- full QProj, resident in VMEM
    # o_ref: (n_hop, TN, D)
    tile_n = x_ref.shape[1]
    num_sub = tile_n // block_rows

    def body(s, carry):
        r0 = pl.multiple_of(s * block_rows, block_rows)
        rows = pl.ds(r0, block_rows)

        for h in range(n_hop):
            # Key embedding for this hop: (BR, A)
            x0 = x_ref[0, rows, :]
            k_emb = jnp.dot(x0, k_ref[h], preferred_element_type=jnp.float32)

            # Per-input attention logits as (BR, 1) columns.
            scores = []
            for i in range(n_input):
                xi = x_ref[i, rows, :]
                q_emb = jnp.dot(xi, q_ref[i, h], preferred_element_type=jnp.float32)
                scores.append(jnp.sum(k_emb * q_emb, axis=-1, keepdims=True))

            # Numerically stable softmax across the n_input scores (exact divide:
            # one VPU reciprocal per row per hop, negligible for a mem-bound kernel).
            m = scores[0]
            for sc in scores[1:]:
                m = jnp.maximum(m, sc)
            exps = [jnp.exp(sc - m) for sc in scores]
            denom = exps[0]
            for e in exps[1:]:
                denom = denom + e
            inv_denom = 1.0 / denom

            # Weighted sum of input embeddings (reload xi from VMEM; cheap vld).
            acc = (exps[0] * inv_denom) * x_ref[0, rows, :].astype(jnp.float32)
            for i in range(1, n_input):
                acc = acc + (exps[i] * inv_denom) * x_ref[i, rows, :].astype(jnp.float32)

            o_ref[h, rows, :] = acc.astype(o_ref.dtype)
        return carry

    lax.fori_loop(0, num_sub, body, 0)


def simple_combine(x_stack, kproj, qproj, *, tile_n=1024, block_rows=128):
    """x_stack: (n_input, N, D); kproj: (n_hop, D, A); qproj: (n_input, n_hop, D, A)."""
    n_input, N, D = x_stack.shape
    n_hop, d2, A = kproj.shape
    assert d2 == D and qproj.shape == (n_input, n_hop, D, A)

    # Clamp tile sizes to the problem, keep multiples of 8 (f32 sublane), and make
    # the row tile a multiple of the in-kernel sub-chunk.
    block_rows = max(8, _round_up(min(block_rows, N), 8))
    tile_n = max(block_rows, _round_up(min(tile_n, N), block_rows))
    n_pad = _round_up(N, tile_n)
    if n_pad != N:
        # Zero padding is safe: padded rows produce a uniform softmax over zero
        # vectors, so their output is zero and is sliced off below.
        x_stack = jnp.pad(x_stack, ((0, 0), (0, n_pad - N), (0, 0)))

    kernel = functools.partial(
        _combine_kernel, n_input=n_input, n_hop=n_hop, block_rows=block_rows)

    out = pl.pallas_call(
        kernel,
        out_shape=jax.ShapeDtypeStruct((n_hop, n_pad, D), x_stack.dtype),
        grid_spec=pltpu.PrefetchScalarGridSpec(
            num_scalar_prefetch=0,
            grid=(n_pad // tile_n,),
            in_specs=[
                # x tile changes with the (only) grid axis; streamed once from HBM.
                pl.BlockSpec((n_input, tile_n, D), lambda n: (0, n, 0)),
                # K/Q are tiny: full arrays, constant index_map -> DMA'd once, resident.
                pl.BlockSpec((n_hop, D, A), lambda n: (0, 0, 0)),
                pl.BlockSpec((n_input, n_hop, D, A), lambda n: (0, 0, 0, 0)),
            ],
            out_specs=pl.BlockSpec((n_hop, tile_n, D), lambda n: (0, n, 0)),
        ),
        compiler_params=pltpu.CompilerParams(
            # Row axis is the only grid axis -> megacore shards rows across TCs.
            dimension_semantics=("parallel",)),
    )(x_stack, kproj, qproj)

    return out if n_pad == N else out[:, :N, :]


def reference(x_stack, kproj, qproj):
    """Pure-JAX mirror of the PyTorch forward for verification."""
    hi = jax.lax.Precision.HIGHEST
    k_emb = jnp.einsum("nd,hda->hna", x_stack[0], kproj, precision=hi)      # (H, N, A)
    q_emb = jnp.einsum("ind,ihda->ihna", x_stack, qproj, precision=hi)      # (I, H, N, A)
    scores = jnp.einsum("hna,ihna->hni", k_emb, q_emb, precision=hi)        # (H, N, I)
    alpha = jax.nn.softmax(scores, axis=-1)
    return jnp.einsum("hni,ind->hnd", alpha, x_stack, precision=hi)         # (H, N, D)


if __name__ == "__main__":
    # Small shapes consistent with the module's forward.
    n_input, n_hop = 3, 2
    N, input_dim, attn_dim = 16, 32, 16

    key = jax.random.PRNGKey(0)
    kx, kk, kq = jax.random.split(key, 3)

    def bf16_snap(a):
        # Snap values to bf16-representable floats so the check is insensitive to
        # MXU f32-matmul pass-count differences between kernel and XLA reference.
        return a.astype(jnp.bfloat16).astype(jnp.float32)

    x_stack = bf16_snap(jax.random.normal(kx, (n_input, N, input_dim), jnp.float32))

    # Deterministic xavier_uniform-style init (same bound formula as PyTorch for a
    # (n_hop, input_dim, attn_dim) tensor: fan_in = input_dim*attn_dim,
    # fan_out = n_hop*attn_dim).
    bound = (6.0 / (input_dim * attn_dim + n_hop * attn_dim)) ** 0.5
    kproj = bf16_snap(jax.random.uniform(kk, (n_hop, input_dim, attn_dim), jnp.float32,
                                         minval=-bound, maxval=bound))
    qproj = bf16_snap(jax.random.uniform(kq, (n_input, n_hop, input_dim, attn_dim),
                                         jnp.float32, minval=-bound, maxval=bound))

    out = simple_combine(x_stack, kproj, qproj)
    jax.block_until_ready(out)

    ref = reference(x_stack, kproj, qproj)
    assert out.shape == (n_hop, N, input_dim)
    assert jnp.allclose(out, ref, atol=1e-3, rtol=1e-3), "mismatch vs pure-JAX reference"

    print("KERNEL_OK")
</pallas_src>

<mosaic_0001>
module attributes {stable_mosaic.version = 11 : i64} {
  func.func @_combine_kernel(%arg0: i32, %arg1: memref<3x16x32xf32, #tpu.memory_space<vmem>>, %arg2: memref<2x32x16xf32, #tpu.memory_space<vmem>>, %arg3: memref<3x2x32x16xf32, #tpu.memory_space<vmem>>, %arg4: memref<2x16x32xf32, #tpu.memory_space<vmem>>) attributes {dimension_semantics = [#tpu.dimension_semantics<parallel>], iteration_bounds = array<i64: 1>, scalar_prefetch = 0 : i64, scratch_operands = 0 : i64, tpu.core_type = #tpu.core_type<tc>, window_params = [{transform_indices = @transform_0, window_bounds = array<i64: 3, 16, 32>}, {pipeline_mode = #tpu.pipeline_mode<synchronous>, transform_indices = @transform_1, window_bounds = array<i64: 2, 32, 16>}, {pipeline_mode = #tpu.pipeline_mode<synchronous>, transform_indices = @transform_2, window_bounds = array<i64: 3, 2, 32, 16>}, {transform_indices = @transform_3, window_bounds = array<i64: 2, 16, 32>}]} {
    %c0_i32 = arith.constant 0 : i32
    %c16_i32 = arith.constant 16 : i32
    %0 = arith.muli %c0_i32, %c16_i32 : i32
    %1 = tpu.assume_multiple %0, 16 : i32
    %c0 = arith.constant 0 : index
    %2 = arith.index_cast %1 : i32 to index
    %c0_0 = arith.constant 0 : index
    %3 = vector.load %arg1[%c0, %2, %c0_0] : memref<3x16x32xf32, #tpu.memory_space<vmem>>, vector<1x16x32xf32>
    %4 = vector.shape_cast %3 : vector<1x16x32xf32> to vector<16x32xf32>
    %c0_1 = arith.constant 0 : index
    %c0_2 = arith.constant 0 : index
    %c0_3 = arith.constant 0 : index
    %5 = vector.load %arg2[%c0_1, %c0_2, %c0_3] : memref<2x32x16xf32, #tpu.memory_space<vmem>>, vector<1x32x16xf32>
    %6 = vector.shape_cast %5 : vector<1x32x16xf32> to vector<32x16xf32>
    %cst = arith.constant dense<0.000000e+00> : vector<16x16xf32>
    %7 = tpu.matmul %4, %6, %cst {dimension_numbers = #tpu.dot_dimension_numbers<[1], [0], [0], [1], [0, 0, 1, 1], [], []>} : vector<16x32xf32>, vector<32x16xf32>, vector<16x16xf32> -> vector<16x16xf32>
    %c0_4 = arith.constant 0 : index
    %8 = arith.index_cast %1 : i32 to index
    %c0_5 = arith.constant 0 : index
    %9 = vector.load %arg1[%c0_4, %8, %c0_5] : memref<3x16x32xf32, #tpu.memory_space<vmem>>, vector<1x16x32xf32>
    %10 = vector.shape_cast %9 : vector<1x16x32xf32> to vector<16x32xf32>
    %c0_6 = arith.constant 0 : index
    %c0_7 = arith.constant 0 : index
    %c0_8 = arith.constant 0 : index
    %c0_9 = arith.constant 0 : index
    %11 = vector.load %arg3[%c0_6, %c0_7, %c0_8, %c0_9] : memref<3x2x32x16xf32, #tpu.memory_space<vmem>>, vector<1x1x32x16xf32>
    %12 = vector.shape_cast %11 : vector<1x1x32x16xf32> to vector<32x16xf32>
    %cst_10 = arith.constant dense<0.000000e+00> : vector<16x16xf32>
    %13 = tpu.matmul %10, %12, %cst_10 {dimension_numbers = #tpu.dot_dimension_numbers<[1], [0], [0], [1], [0, 0, 1, 1], [], []>} : vector<16x32xf32>, vector<32x16xf32>, vector<16x16xf32> -> vector<16x16xf32>
    %14 = arith.mulf %7, %13 : vector<16x16xf32>
    %cst_11 = arith.constant dense<0.000000e+00> : vector<16xf32>
    %15 = vector.multi_reduction <add>, %14, %cst_11 [1] : vector<16x16xf32> to vector<16xf32>
    %16 = vector.shape_cast %15 : vector<16xf32> to vector<16x1xf32>
    %c1 = arith.constant 1 : index
    %17 = arith.index_cast %1 : i32 to index
    %c0_12 = arith.constant 0 : index
    %18 = vector.load %arg1[%c1, %17, %c0_12] : memref<3x16x32xf32, #tpu.memory_space<vmem>>, vector<1x16x32xf32>
    %19 = vector.shape_cast %18 : vector<1x16x32xf32> to vector<16x32xf32>
    %c1_13 = arith.constant 1 : index
    %c0_14 = arith.constant 0 : index
    %c0_15 = arith.constant 0 : index
    %c0_16 = arith.constant 0 : index
    %20 = vector.load %arg3[%c1_13, %c0_14, %c0_15, %c0_16] : memref<3x2x32x16xf32, #tpu.memory_space<vmem>>, vector<1x1x32x16xf32>
    %21 = vector.shape_cast %20 : vector<1x1x32x16xf32> to vector<32x16xf32>
    %cst_17 = arith.constant dense<0.000000e+00> : vector<16x16xf32>
    %22 = tpu.matmul %19, %21, %cst_17 {dimension_numbers = #tpu.dot_dimension_numbers<[1], [0], [0], [1], [0, 0, 1, 1], [], []>} : vector<16x32xf32>, vector<32x16xf32>, vector<16x16xf32> -> vector<16x16xf32>
    %23 = arith.mulf %7, %22 : vector<16x16xf32>
    %cst_18 = arith.constant dense<0.000000e+00> : vector<16xf32>
    %24 = vector.multi_reduction <add>, %23, %cst_18 [1] : vector<16x16xf32> to vector<16xf32>
    %25 = vector.shape_cast %24 : vector<16xf32> to vector<16x1xf32>
    %c2 = arith.constant 2 : index
    %26 = arith.index_cast %1 : i32 to index
    %c0_19 = arith.constant 0 : index
    %27 = vector.load %arg1[%c2, %26, %c0_19] : memref<3x16x32xf32, #tpu.memory_space<vmem>>, vector<1x16x32xf32>
    %28 = vector.shape_cast %27 : vector<1x16x32xf32> to vector<16x32xf32>
    %c2_20 = arith.constant 2 : index
    %c0_21 = arith.constant 0 : index
    %c0_22 = arith.constant 0 : index
    %c0_23 = arith.constant 0 : index
    %29 = vector.load %arg3[%c2_20, %c0_21, %c0_22, %c0_23] : memref<3x2x32x16xf32, #tpu.memory_space<vmem>>, vector<1x1x32x16xf32>
    %30 = vector.shape_cast %29 : vector<1x1x32x16xf32> to vector<32x16xf32>
    %cst_24 = arith.constant dense<0.000000e+00> : vector<16x16xf32>
    %31 = tpu.matmul %28, %30, %cst_24 {dimension_numbers = #tpu.dot_dimension_numbers<[1], [0], [0], [1], [0, 0, 1, 1], [], []>} : vector<16x32xf32>, vector<32x16xf32>, vector<16x16xf32> -> vector<16x16xf32>
    %32 = arith.mulf %7, %31 : vector<16x16xf32>
    %cst_25 = arith.constant dense<0.000000e+00> : vector<16xf32>
    %33 = vector.multi_reduction <add>, %32, %cst_25 [1] : vector<16x16xf32> to vector<16xf32>
    %34 = vector.shape_cast %33 : vector<16xf32> to vector<16x1xf32>
    %35 = arith.maximumf %16, %25 : vector<16x1xf32>
    %36 = arith.maximumf %35, %34 : vector<16x1xf32>
    %37 = arith.subf %16, %36 : vector<16x1xf32>
    %38 = math.exp %37 : vector<16x1xf32>
    %39 = arith.subf %25, %36 : vector<16x1xf32>
    %40 = math.exp %39 : vector<16x1xf32>
    %41 = arith.subf %34, %36 : vector<16x1xf32>
    %42 = math.exp %41 : vector<16x1xf32>
    %43 = arith.addf %38, %40 : vector<16x1xf32>
    %44 = arith.addf %43, %42 : vector<16x1xf32>
    %cst_26 = arith.constant 1.000000e+00 : f32
    %45 = vector.broadcast %cst_26 : f32 to vector<16x1xf32>
    %46 = arith.divf %45, %44 : vector<16x1xf32>
    %47 = arith.mulf %38, %46 : vector<16x1xf32>
    %c0_27 = arith.constant 0 : index
    %48 = arith.index_cast %1 : i32 to index
    %c0_28 = arith.constant 0 : index
    %49 = vector.load %arg1[%c0_27, %48, %c0_28] : memref<3x16x32xf32, #tpu.memory_space<vmem>>, vector<1x16x32xf32>
    %50 = vector.shape_cast %49 : vector<1x16x32xf32> to vector<16x32xf32>
    %51 = vector.broadcast %47 : vector<16x1xf32> to vector<16x32xf32>
    %52 = arith.mulf %51, %50 : vector<16x32xf32>
    %53 = arith.mulf %40, %46 : vector<16x1xf32>
    %c1_29 = arith.constant 1 : index
    %54 = arith.index_cast %1 : i32 to index
    %c0_30 = arith.constant 0 : index
    %55 = vector.load %arg1[%c1_29, %54, %c0_30] : memref<3x16x32xf32, #tpu.memory_space<vmem>>, vector<1x16x32xf32>
    %56 = vector.shape_cast %55 : vector<1x16x32xf32> to vector<16x32xf32>
    %57 = vector.broadcast %53 : vector<16x1xf32> to vector<16x32xf32>
    %58 = arith.mulf %57, %56 : vector<16x32xf32>
    %59 = arith.addf %52, %58 : vector<16x32xf32>
    %60 = arith.mulf %42, %46 : vector<16x1xf32>
    %c2_31 = arith.constant 2 : index
    %61 = arith.index_cast %1 : i32 to index
    %c0_32 = arith.constant 0 : index
    %62 = vector.load %arg1[%c2_31, %61, %c0_32] : memref<3x16x32xf32, #tpu.memory_space<vmem>>, vector<1x16x32xf32>
    %63 = vector.shape_cast %62 : vector<1x16x32xf32> to vector<16x32xf32>
    %64 = vector.broadcast %60 : vector<16x1xf32> to vector<16x32xf32>
    %65 = arith.mulf %64, %63 : vector<16x32xf32>
    %66 = arith.addf %59, %65 : vector<16x32xf32>
    %c0_33 = arith.constant 0 : index
    %67 = arith.index_cast %1 : i32 to index
    %c0_34 = arith.constant 0 : index
    %68 = vector.load %arg4[%c0_33, %67, %c0_34] : memref<2x16x32xf32, #tpu.memory_space<vmem>>, vector<1x16x32xf32>
    %69 = vector.shape_cast %68 : vector<1x16x32xf32> to vector<16x32xf32>
    %70 = vector.shape_cast %66 : vector<16x32xf32> to vector<1x16x32xf32>
    tpu.vector_store %arg4[%c0_33, %67, %c0_34], %70 {strides = array<i32>} : memref<2x16x32xf32, #tpu.memory_space<vmem>>, vector<1x16x32xf32>,
    %c0_35 = arith.constant 0 : index
    %71 = arith.index_cast %1 : i32 to index
    %c0_36 = arith.constant 0 : index
    %72 = vector.load %arg1[%c0_35, %71, %c0_36] : memref<3x16x32xf32, #tpu.memory_space<vmem>>, vector<1x16x32xf32>
    %73 = vector.shape_cast %72 : vector<1x16x32xf32> to vector<16x32xf32>
    %c1_37 = arith.constant 1 : index
    %c0_38 = arith.constant 0 : index
    %c0_39 = arith.constant 0 : index
    %74 = vector.load %arg2[%c1_37, %c0_38, %c0_39] : memref<2x32x16xf32, #tpu.memory_space<vmem>>, vector<1x32x16xf32>
    %75 = vector.shape_cast %74 : vector<1x32x16xf32> to vector<32x16xf32>
    %cst_40 = arith.constant dense<0.000000e+00> : vector<16x16xf32>
    %76 = tpu.matmul %73, %75, %cst_40 {dimension_numbers = #tpu.dot_dimension_numbers<[1], [0], [0], [1], [0, 0, 1, 1], [], []>} : vector<16x32xf32>, vector<32x16xf32>, vector<16x16xf32> -> vector<16x16xf32>
    %c0_41 = arith.constant 0 : index
    %77 = arith.index_cast %1 : i32 to index
    %c0_42 = arith.constant 0 : index
    %78 = vector.load %arg1[%c0_41, %77, %c0_42] : memref<3x16x32xf32, #tpu.memory_space<vmem>>, vector<1x16x32xf32>
    %79 = vector.shape_cast %78 : vector<1x16x32xf32> to vector<16x32xf32>
    %c0_43 = arith.constant 0 : index
    %c1_44 = arith.constant 1 : index
    %c0_45 = arith.constant 0 : index
    %c0_46 = arith.constant 0 : index
    %80 = vector.load %arg3[%c0_43, %c1_44, %c0_45, %c0_46] : memref<3x2x32x16xf32, #tpu.memory_space<vmem>>, vector<1x1x32x16xf32>
    %81 = vector.shape_cast %80 : vector<1x1x32x16xf32> to vector<32x16xf32>
    %cst_47 = arith.constant dense<0.000000e+00> : vector<16x16xf32>
    %82 = tpu.matmul %79, %81, %cst_47 {dimension_numbers = #tpu.dot_dimension_numbers<[1], [0], [0], [1], [0, 0, 1, 1], [], []>} : vector<16x32xf32>, vector<32x16xf32>, vector<16x16xf32> -> vector<16x16xf32>
    %83 = arith.mulf %76, %82 : vector<16x16xf32>
    %cst_48 = arith.constant dense<0.000000e+00> : vector<16xf32>
    %84 = vector.multi_reduction <add>, %83, %cst_48 [1] : vector<16x16xf32> to vector<16xf32>
    %85 = vector.shape_cast %84 : vector<16xf32> to vector<16x1xf32>
    %c1_49 = arith.constant 1 : index
    %86 = arith.index_cast %1 : i32 to index
    %c0_50 = arith.constant 0 : index
    %87 = vector.load %arg1[%c1_49, %86, %c0_50] : memref<3x16x32xf32, #tpu.memory_space<vmem>>, vector<1x16x32xf32>
    %88 = vector.shape_cast %87 : vector<1x16x32xf32> to vector<16x32xf32>
    %c1_51 = arith.constant 1 : index
    %c1_52 = arith.constant 1 : index
    %c0_53 = arith.constant 0 : index
    %c0_54 = arith.constant 0 : index
    %89 = vector.load %arg3[%c1_51, %c1_52, %c0_53, %c0_54] : memref<3x2x32x16xf32, #tpu.memory_space<vmem>>, vector<1x1x32x16xf32>
    %90 = vector.shape_cast %89 : vector<1x1x32x16xf32> to vector<32x16xf32>
    %cst_55 = arith.constant dense<0.000000e+00> : vector<16x16xf32>
    %91 = tpu.matmul %88, %90, %cst_55 {dimension_numbers = #tpu.dot_dimension_numbers<[1], [0], [0], [1], [0, 0, 1, 1], [], []>} : vector<16x32xf32>, vector<32x16xf32>, vector<16x16xf32> -> vector<16x16xf32>
    %92 = arith.mulf %76, %91 : vector<16x16xf32>
    %cst_56 = arith.constant dense<0.000000e+00> : vector<16xf32>
    %93 = vector.multi_reduction <add>, %92, %cst_56 [1] : vector<16x16xf32> to vector<16xf32>
    %94 = vector.shape_cast %93 : vector<16xf32> to vector<16x1xf32>
    %c2_57 = arith.constant 2 : index
    %95 = arith.index_cast %1 : i32 to index
    %c0_58 = arith.constant 0 : index
    %96 = vector.load %arg1[%c2_57, %95, %c0_58] : memref<3x16x32xf32, #tpu.memory_space<vmem>>, vector<1x16x32xf32>
    %97 = vector.shape_cast %96 : vector<1x16x32xf32> to vector<16x32xf32>
    %c2_59 = arith.constant 2 : index
    %c1_60 = arith.constant 1 : index
    %c0_61 = arith.constant 0 : index
    %c0_62 = arith.constant 0 : index
    %98 = vector.load %arg3[%c2_59, %c1_60, %c0_61, %c0_62] : memref<3x2x32x16xf32, #tpu.memory_space<vmem>>, vector<1x1x32x16xf32>
    %99 = vector.shape_cast %98 : vector<1x1x32x16xf32> to vector<32x16xf32>
    %cst_63 = arith.constant dense<0.000000e+00> : vector<16x16xf32>
    %100 = tpu.matmul %97, %99, %cst_63 {dimension_numbers = #tpu.dot_dimension_numbers<[1], [0], [0], [1], [0, 0, 1, 1], [], []>} : vector<16x32xf32>, vector<32x16xf32>, vector<16x16xf32> -> vector<16x16xf32>
    %101 = arith.mulf %76, %100 : vector<16x16xf32>
    %cst_64 = arith.constant dense<0.000000e+00> : vector<16xf32>
    %102 = vector.multi_reduction <add>, %101, %cst_64 [1] : vector<16x16xf32> to vector<16xf32>
    %103 = vector.shape_cast %102 : vector<16xf32> to vector<16x1xf32>
    %104 = arith.maximumf %85, %94 : vector<16x1xf32>
    %105 = arith.maximumf %104, %103 : vector<16x1xf32>
    %106 = arith.subf %85, %105 : vector<16x1xf32>
    %107 = math.exp %106 : vector<16x1xf32>
    %108 = arith.subf %94, %105 : vector<16x1xf32>
    %109 = math.exp %108 : vector<16x1xf32>
    %110 = arith.subf %103, %105 : vector<16x1xf32>
    %111 = math.exp %110 : vector<16x1xf32>
    %112 = arith.addf %107, %109 : vector<16x1xf32>
    %113 = arith.addf %112, %111 : vector<16x1xf32>
    %cst_65 = arith.constant 1.000000e+00 : f32
    %114 = vector.broadcast %cst_65 : f32 to vector<16x1xf32>
    %115 = arith.divf %114, %113 : vector<16x1xf32>
    %116 = arith.mulf %107, %115 : vector<16x1xf32>
    %c0_66 = arith.constant 0 : index
    %117 = arith.index_cast %1 : i32 to index
    %c0_67 = arith.constant 0 : index
    %118 = vector.load %arg1[%c0_66, %117, %c0_67] : memref<3x16x32xf32, #tpu.memory_space<vmem>>, vector<1x16x32xf32>
    %119 = vector.shape_cast %118 : vector<1x16x32xf32> to vector<16x32xf32>
    %120 = vector.broadcast %116 : vector<16x1xf32> to vector<16x32xf32>
    %121 = arith.mulf %120, %119 : vector<16x32xf32>
    %122 = arith.mulf %109, %115 : vector<16x1xf32>
    %c1_68 = arith.constant 1 : index
    %123 = arith.index_cast %1 : i32 to index
    %c0_69 = arith.constant 0 : index
    %124 = vector.load %arg1[%c1_68, %123, %c0_69] : memref<3x16x32xf32, #tpu.memory_space<vmem>>, vector<1x16x32xf32>
    %125 = vector.shape_cast %124 : vector<1x16x32xf32> to vector<16x32xf32>
    %126 = vector.broadcast %122 : vector<16x1xf32> to vector<16x32xf32>
    %127 = arith.mulf %126, %125 : vector<16x32xf32>
    %128 = arith.addf %121, %127 : vector<16x32xf32>
    %129 = arith.mulf %111, %115 : vector<16x1xf32>
    %c2_70 = arith.constant 2 : index
    %130 = arith.index_cast %1 : i32 to index
    %c0_71 = arith.constant 0 : index
    %131 = vector.load %arg1[%c2_70, %130, %c0_71] : memref<3x16x32xf32, #tpu.memory_space<vmem>>, vector<1x16x32xf32>
    %132 = vector.shape_cast %131 : vector<1x16x32xf32> to vector<16x32xf32>
    %133 = vector.broadcast %129 : vector<16x1xf32> to vector<16x32xf32>
    %134 = arith.mulf %133, %132 : vector<16x32xf32>
    %135 = arith.addf %128, %134 : vector<16x32xf32>
    %c1_72 = arith.constant 1 : index
    %136 = arith.index_cast %1 : i32 to index
    %c0_73 = arith.constant 0 : index
    %137 = vector.load %arg4[%c1_72, %136, %c0_73] : memref<2x16x32xf32, #tpu.memory_space<vmem>>, vector<1x16x32xf32>
    %138 = vector.shape_cast %137 : vector<1x16x32xf32> to vector<16x32xf32>
    %139 = vector.shape_cast %135 : vector<16x32xf32> to vector<1x16x32xf32>
    tpu.vector_store %arg4[%c1_72, %136, %c0_73], %139 {strides = array<i32>} : memref<2x16x32xf32, #tpu.memory_space<vmem>>, vector<1x16x32xf32>,
    %c1_i32 = arith.constant 1 : i32
    return
  }
  func.func @transform_0(%arg0: i32) -> (i32, i32, i32) {
    %c0_i32 = arith.constant 0 : i32
    %c0_i32_0 = arith.constant 0 : i32
    %c0_i32_1 = arith.constant 0 : i32
    return %c0_i32, %arg0, %c0_i32_0 : i32, i32, i32
  }
  func.func @transform_1(%arg0: i32) -> (i32, i32, i32) {
    %c0_i32 = arith.constant 0 : i32
    %c0_i32_0 = arith.constant 0 : i32
    %c0_i32_1 = arith.constant 0 : i32
    %c0_i32_2 = arith.constant 0 : i32
    return %c0_i32, %c0_i32_0, %c0_i32_1 : i32, i32, i32
  }
  func.func @transform_2(%arg0: i32) -> (i32, i32, i32, i32) {
    %c0_i32 = arith.constant 0 : i32
    %c0_i32_0 = arith.constant 0 : i32
    %c0_i32_1 = arith.constant 0 : i32
    %c0_i32_2 = arith.constant 0 : i32
    %c0_i32_3 = arith.constant 0 : i32
    return %c0_i32, %c0_i32_0, %c0_i32_1, %c0_i32_2 : i32, i32, i32, i32
  }
  func.func @transform_3(%arg0: i32) -> (i32, i32, i32) {
    %c0_i32 = arith.constant 0 : i32
    %c0_i32_0 = arith.constant 0 : i32
    %c0_i32_1 = arith.constant 0 : i32
    return %c0_i32, %arg0, %c0_i32_0 : i32, i32, i32
  }
}

</mosaic_0001>

<bundles_post_ra>
// kernel: tpu_custom_call.1
= control target key start
LH: loop header
LB: loop body
LE: loop exit
PB: predicated region body
PF: predicated region fallthrough
CT: control target
= control target key end

     0   :  { %vm21_vm0 = vcmask 261120   ;;  %s842_s0 = inlined_call_operand.vmem [shape: f32[3,16,32], index: 0, kind: input, shape index: {}]   ;;  %s843_s1 = inlined_call_operand.vmem [shape: f32[2,32,16], index: 1, kind: input, shape index: {}]   ;;  %s844_s2 = inlined_call_operand.vmem [shape: f32[3,2,32,16], index: 2, kind: input, shape index: {}]   ;;  %s845_s3 = inlined_call_operand.hbm [shape: f32[2,16,32], index: 3, kind: output, shape index: {}]  }
   0x1   :  { %v20_v0 = vld [vmem:[%s843_s1 + $0x18] sm:$0xff]  ;;  %v19_v4 = vld [vmem:[%s843_s1 + $0x10] sm:$0xff]  ;;  %v18_v8 = vld [vmem:[%s843_s1 + $0x8] sm:$0xff] }
   0x2   :  { %v54_v1 = vld [vmem:[%s844_s2 + $0x18] sm:$0xff]  ;;  %40 = vmatpush.msra.mxu0 %v20_v0  ;;  %v53_v5 = vld [vmem:[%s844_s2 + $0x10] sm:$0xff]  ;;  %v52_v9 = vld [vmem:[%s844_s2 + $0x8] sm:$0xff] }
   0x3   :  { %v518_v2 = vld [vmem:[%s844_s2 + $0x58] sm:$0xff]  ;;  %67 = vmatpush.msra.mxu1 %v54_v1  ;;  %v517_v6 = vld [vmem:[%s844_s2 + $0x50] sm:$0xff]  ;;  %v516_v10 = vld [vmem:[%s844_s2 + $0x48] sm:$0xff] }
   0x4   :  { %v526_v3 = vld [vmem:[%s844_s2 + $0x98] sm:$0xff]  ;;  %114 = vmatpush.msra.mxu2 %v518_v2  ;;  %v525_v7 = vld [vmem:[%s844_s2 + $0x90] sm:$0xff]  ;;  %41 = vmatpush.msra.mxu0 %v19_v4  ;;  %v524_v11 = vld [vmem:[%s844_s2 + $0x88] sm:$0xff] }
   0x5   :  { %160 = vmatpush.msra.mxu3 %v526_v3  ;;  %68 = vmatpush.msra.mxu1 %v53_v5  ;;  %v17_v12 = vld [vmem:[%s843_s1] sm:$0xff]  ;;  %v697_v17 = vld [vmem:[%s842_s0 + $0x10] sm:$0xff]  ;;  %v546_v19 = vld [vmem:[%s844_s2 + $0x78] sm:$0xff] }
   0x6   :  { %115 = vmatpush.msra.mxu2 %v517_v6  ;;  %v51_v13 = vld [vmem:[%s844_s2] sm:$0xff]  ;;  %42 = vmatpush.msra.mxu0 %v18_v8  ;;  %v532_v20 = vld [vmem:[%s843_s1 + $0x38] sm:$0xff]  ;;  %v545_v23 = vld [vmem:[%s844_s2 + $0x70] sm:$0xff] }
   0x7   :  { %161 = vmatpush.msra.mxu3 %v525_v7  ;;  %69 = vmatpush.msra.mxu1 %v52_v9  ;;  %v515_v14 = vld [vmem:[%s844_s2 + $0x40] sm:$0xff]  ;;  %v538_v21 = vld [vmem:[%s844_s2 + $0x38] sm:$0xff]  ;;  %v531_v24 = vld [vmem:[%s843_s1 + $0x30] sm:$0xff] }
   0x8   :  { %v523_v15 = vld [vmem:[%s844_s2 + $0x80] sm:$0xff]  ;;  %116 = vmatpush.msra.mxu2 %v516_v10  ;;  %43 = vmatpush.msra.mxu0 %v17_v12  ;;  %v554_v22 = vld [vmem:[%s844_s2 + $0xb8] sm:$0xff]  ;;  %v537_v25 = vld [vmem:[%s844_s2 + $0x30] sm:$0xff] }
   0x9   :  { %162 = vmatpush.msra.mxu3 %v524_v11  ;;  %v692_v16 = vld [vmem:[%s842_s0] sm:$0xff]  ;;  %70 = vmatpush.msra.mxu1 %v51_v13  ;;  %v553_v26 = vld [vmem:[%s844_s2 + $0xb0] sm:$0xff]  ;;  %v544_v27 = vld [vmem:[%s844_s2 + $0x68] sm:$0xff] }
   0xa   :  { %v702_v18 = vld [vmem:[%s842_s0 + $0x20] sm:$0xff]  ;;  %117 = vmatpush.msra.mxu2 %v515_v14  ;;  %509 = vmatmul.msk.f32.vlgmr.msra.gmra.mxu0 %vm21_vm0, %v692_v16  ;;  %v530_v28 = vld [vmem:[%s843_s1 + $0x28] sm:$0xff] }
   0xb   :  { %163 = vmatpush.msra.mxu3 %v523_v15  ;;  %511 = vmatmul.msk.f32.vlgmr.msra.gmra.mxu1 %vm21_vm0, %v692_v16 }
   0xc   :  { %519 = vmatmul.msk.f32.vlgmr.msra.gmra.mxu2 %vm21_vm0, %v697_v17  ;;  %527 = vmatmul.msk.f32.vlgmr.msra.gmra.mxu3 %vm21_vm0, %v702_v18 }
   0xd   :  { %350 = vmatpush.msrb.mxu2 %v546_v19  ;;  %278 = vmatpush.msrb.mxu0 %v532_v20 }
   0xe   :  { %306 = vmatpush.msrb.mxu1 %v538_v21  ;;  %394 = vmatpush.msrb.mxu3 %v554_v22 }
   0xf   :  { %8 = vsyncpa [#allocation3], 0  ;;  %351 = vmatpush.msrb.mxu2 %v545_v23  ;;  %279 = vmatpush.msrb.mxu0 %v531_v24  ;;  %v536_v29 = vld [vmem:[%s844_s2 + $0x28] sm:$0xff]  ;;  %v756_v32 = vld [vmem:[%s842_s0 + $0x18] sm:$0xff]  ;;  %vm80_vm1 = vcmask 130048   ;;  %s494_s8 = sshll.u32 %s845_s3, 4  ;;  %s495_s8 = int_to_ptr.hbm [resolvable:$true] %s494_s8 }
  0x10   :  { %v552_v30 = vld [vmem:[%s844_s2 + $0xa8] sm:$0xff]  ;;  %307 = vmatpush.msrb.mxu1 %v537_v25  ;;  %395 = vmatpush.msrb.mxu3 %v553_v26  ;;  %v543_v34 = vld [vmem:[%s844_s2 + $0x60] sm:$0xff]  ;;  %s619_s9 = smov 128   ;;  %s620_s10 = smov 8  }
  0x11   :  { %v751_v31 = vld [vmem:[%s842_s0 + $0x8] sm:$0xff]  ;;  %352 = vmatpush.msrb.mxu2 %v544_v27  ;;  %280 = vmatpush.msrb.mxu0 %v530_v28  ;;  %v529_v35 = vld [vmem:[%s843_s1 + $0x20] sm:$0xff]  ;;  %s618_s1 = smov [#allocation2]  }
  0x12   :  { %v761_v33 = vld [vmem:[%s842_s0 + $0x28] sm:$0xff]  ;;  %308 = vmatpush.msrb.mxu1 %v536_v29  ;;  %396 = vmatpush.msrb.mxu3 %v552_v30  ;;  %v535_v36 = vld [vmem:[%s844_s2 + $0x20] sm:$0xff] }
  0x13   :  { %510 = vmatmul.msk.f32.gmra.mxu0 %vm21_vm0, %v751_v31  ;;  %512 = vmatmul.msk.f32.gmra.mxu1 %vm21_vm0, %v751_v31  ;;  %v551_v37 = vld [vmem:[%s844_s2 + $0xa0] sm:$0xff]  ;;  %s492_s2 = sshll.u32 %s618_s1, 4  ;;  %s493_s2 = int_to_ptr.vmem [resolvable:$true] %s492_s2 }
  0x14   :  { %520 = vmatmul.msk.f32.gmra.mxu2 %vm21_vm0, %v756_v32  ;;  %528 = vmatmul.msk.f32.gmra.mxu3 %vm21_vm0, %v761_v33 }
  0x15   :  { %353 = vmatpush.msrb.mxu2 %v543_v34  ;;  %281 = vmatpush.msrb.mxu0 %v529_v35 }
  0x16   :  { %309 = vmatpush.msrb.mxu1 %v535_v36  ;;  %397 = vmatpush.msrb.mxu3 %v551_v37 }
  0x1b   :  { %533 = vmatmul.msk.f32.vlgmr.msrb.gmra.mxu0 %vm21_vm0, %v692_v16  ;;  %539 = vmatmul.msk.f32.vlgmr.msrb.gmra.mxu1 %vm21_vm0, %v692_v16 }
  0x1c   :  { %547 = vmatmul.msk.f32.vlgmr.msrb.gmra.mxu2 %vm21_vm0, %v697_v17  ;;  %555 = vmatmul.msk.f32.vlgmr.msrb.gmra.mxu3 %vm21_vm0, %v702_v18 }
  0x23   :  { %534 = vmatmul.msk.f32.gmra.mxu0 %vm21_vm0, %v751_v31  ;;  %540 = vmatmul.msk.f32.gmra.mxu1 %vm21_vm0, %v751_v31 }
  0x24   :  { %548 = vmatmul.msk.f32.gmra.mxu2 %vm21_vm0, %v756_v32  ;;  %556 = vmatmul.msk.f32.gmra.mxu3 %vm21_vm0, %v761_v33 }
  0x87   :  { %v45_v38 = vpop.f32.mrf.mxu0 }
  0x88   :  { %v72_v39 = vpop.f32.mrf.mxu1 }
  0x89   :  { %v78_v40 = vmul.f32 %v72_v39, %v45_v38 }
  0x8b   :  { %v81_v41 = vsel %vm80_vm1, %v78_v40, 0.0 }
  0x8c   :  { %82 = vadd.xlane.f32.xlu0 %v81_v41 }
  0x8f   :  { %v119_v42 = vpop.f32.mrf.mxu2  ;;  %v165_v43 = vpop.f32.mrf.mxu3 }
  0x90   :  { %v125_v44 = vmul.f32 %v119_v42, %v45_v38  ;;  %v171_v45 = vmul.f32 %v165_v43, %v45_v38  ;;  %v48_v46 = vpop.f32.mrf.mxu0  ;;  %v75_v47 = vpop.f32.mrf.mxu1 }
  0x91   :  { %v79_v48 = vmul.f32 %v75_v47, %v48_v46 }
  0x92   :  { %v173_v49 = vsel %vm80_vm1, %v171_v45, 0.0  ;;  %v127_v50 = vsel %vm80_vm1, %v125_v44, 0.0 }
  0x93   :  { %174 = vadd.xlane.f32.xlu2 %v173_v49  ;;  %128 = vadd.xlane.f32.xlu1 %v127_v50  ;;  %v84_v51 = vsel %vm80_vm1, %v79_v48, 0.0 }
  0x94   :  { %85 = vadd.xlane.f32.xlu0 %v84_v51 }
  0x97   :  { %v122_v52 = vpop.f32.mrf.mxu2  ;;  %v168_v53 = vpop.f32.mrf.mxu3 }
  0x98   :  { %v126_v54 = vmul.f32 %v122_v52, %v48_v46  ;;  %v283_v55 = vpop.f32.mrf.mxu0  ;;  %v311_v56 = vpop.f32.mrf.mxu1  ;;  %v172_v4 = vmul.f32 %v168_v53, %v48_v46 }
  0x99   :  { %v317_v57 = vmul.f32 %v311_v56, %v283_v55 }
  0x9a   :  { %v130_v58 = vsel %vm80_vm1, %v126_v54, 0.0  ;;  %v176_v10 = vsel %vm80_vm1, %v172_v4, 0.0 }
  0x9b   :  { %131 = vadd.xlane.f32.xlu1 %v130_v58  ;;  %v319_v59 = vsel %vm80_vm1, %v317_v57, 0.0 }
  0x9c   :  { %320 = vadd.xlane.f32.xlu2 %v319_v59 }
  0x9f   :  { %v355_v60 = vpop.f32.mrf.mxu2  ;;  %v399_v61 = vpop.f32.mrf.mxu3 }
  0xa0   :  { %v361_v62 = vmul.f32 %v355_v60, %v283_v55  ;;  %v286_v63 = vpop.f32.mrf.mxu0  ;;  %v314_v0 = vpop.f32.mrf.mxu1  ;;  %v405_v12 = vmul.f32 %v399_v61, %v283_v55 }
  0xa1   :  { %v318_v1 = vmul.f32 %v314_v0, %v286_v63 }
  0xa2   :  { %v363_v2 = vsel %vm80_vm1, %v361_v62, 0.0  ;;  %v407_v13 = vsel %vm80_vm1, %v405_v12, 0.0 }
  0xa3   :  { %364 = vadd.xlane.f32.xlu0 %v363_v2  ;;  %v322_v3 = vsel %vm80_vm1, %v318_v1, 0.0 }
  0xa4   :  { %323 = vadd.xlane.f32.xlu2 %v322_v3 }
  0xa7   :  { %v358_v5 = vpop.f32.mrf.mxu2  ;;  %v402_v6 = vpop.f32.mrf.mxu3 }
  0xa8   :  { %v362_v7 = vmul.f32 %v358_v5, %v286_v63  ;;  %v406_v8 = vmul.f32 %v402_v6, %v286_v63 }
  0xaa   :  { %v366_v9 = vsel %vm80_vm1, %v362_v7, 0.0  ;;  %v410_v11 = vsel %vm80_vm1, %v406_v8, 0.0 }
  0xab   :  { %367 = vadd.xlane.f32.xlu1 %v366_v9  ;;  %177 = vadd.xlane.f32.xlu0 %v176_v10 }
  0xac   :  { %411 = vadd.xlane.f32.xlu2 %v410_v11 }
  0xb3   :  { %408 = vadd.xlane.f32.xlu1 %v407_v13 }
  0xff   :  { %v83_v14 = vpop.xlane.xlu0 %82 }
 0x106   :  { %v129_v15 = vpop.xlane.xlu1 %128  ;;  %v175_v19 = vpop.xlane.xlu2 %174 }
 0x107   :  { %v179_v20 = vmax.f32 %v83_v14, %v129_v15  ;;  %v86_v25 = vpop.xlane.xlu0 %85 }
 0x109   :  { %v181_v21 = vmax.f32 %v179_v20, %v175_v19 }
 0x10b   :  { %v183_v22 = vsub.f32 %v83_v14, %v181_v21  ;;  %v189_v23 = vsub.f32 %v129_v15, %v181_v21  ;;  %v195_v24 = vsub.f32 %v175_v19, %v181_v21 }
 0x10d   :  { %v185_v26 = vmul.f32 1.442695, %v183_v22  ;;  %v191_v27 = vmul.f32 1.442695, %v189_v23  ;;  %v197_v28 = vmul.f32 1.442695, %v195_v24 }
 0x10e   :  { %v132_v35 = vpop.xlane.xlu1 %131 }
 0x10f   :  { %560 = vpow2.f32 %v185_v26  ;;  %v321_v29 = vpop.xlane.xlu2 %320  ;;  %v180_v41 = vmax.f32 %v86_v25, %v132_v35 }
 0x110   :  { %562 = vpow2.f32 %v191_v27 }
 0x111   :  { %564 = vpow2.f32 %v197_v28 }
 0x115   :  { %v561_v30 = vpop.eup %560 }
 0x116   :  { %v563_v34 = vpop.eup %562  ;;  %v365_v36 = vpop.xlane.xlu0 %364 }
 0x117   :  { %v201_v37 = vadd.f32 %v563_v34, %v561_v30  ;;  %v324_v38 = vpop.xlane.xlu2 %323  ;;  %v565_v39 = vpop.eup %564  ;;  %v413_v62 = vmax.f32 %v321_v29, %v365_v36 }
 0x119   :  { %v203_v40 = vadd.f32 %v565_v39, %v201_v37 }
 0x11b   :  { %566 = vrcp.f32 %v203_v40  ;;  %v216_v58 = vand.u32 2147483648, %v203_v40  ;;  %v214_v61 = vand.u32 2147483647, %v203_v40  ;;  %vm210_vm3 = vweird.f32 %v203_v40 }
 0x11d   :  { %v217_v6 = vor.u32 1.1754944e-38, %v216_v58  ;;  %vm215_vm5 = vcmp.eq.f32.partialorder %v214_v61, 8.507059e+37 }
 0x11e   :  { %v368_v42 = vpop.xlane.xlu1 %367  ;;  %v178_v43 = vpop.xlane.xlu0 %177 }
 0x11f   :  { %v414_v44 = vmax.f32 %v324_v38, %v368_v42  ;;  %v182_v45 = vmax.f32 %v180_v41, %v178_v43  ;;  %v412_v46 = vpop.xlane.xlu2 %411 }
 0x121   :  { %v567_v47 = vpop.eup %566  ;;  %v184_v48 = vsub.f32 %v86_v25, %v182_v45  ;;  %v190_v49 = vsub.f32 %v132_v35, %v182_v45  ;;  %v196_v50 = vsub.f32 %v178_v43, %v182_v45  ;;  %v416_v51 = vmax.f32 %v414_v44, %v412_v46 }
 0x122   :  { %v206_v52 = vmul.f32 %v567_v47, %v203_v40  ;;  %vm211_vm2 = vweird.f32 %v567_v47 }
 0x123   :  { %v187_v53 = vmul.f32 1.442695, %v184_v48  ;;  %v193_v54 = vmul.f32 1.442695, %v190_v49  ;;  %v199_v55 = vmul.f32 1.442695, %v196_v50  ;;  %v418_v56 = vsub.f32 %v324_v38, %v416_v51  ;;  %vm212_vm4 = vmor %vm210_vm3, %vm211_vm2 }
 0x124   :  { %v207_v57 = vsub.f32 1.0, %v206_v52  ;;  %v424_v59 = vsub.f32 %v368_v42, %v416_v51  ;;  %v430_v60 = vsub.f32 %v412_v46, %v416_v51 }
 0x125   :  { %568 = vpow2.f32 %v187_v53  ;;  %v421_v63 = vmul.f32 1.442695, %v418_v56 }
 0x126   :  { %v208_v0 = vmul.f32 %v567_v47, %v207_v57  ;;  %570 = vpow2.f32 %v193_v54  ;;  %v427_v1 = vmul.f32 1.442695, %v424_v59  ;;  %v409_v2 = vpop.xlane.xlu1 %408  ;;  %v433_v3 = vmul.f32 1.442695, %v430_v60 }
 0x127   :  { %572 = vpow2.f32 %v199_v55  ;;  %v415_v4 = vmax.f32 %v413_v62, %v409_v2 }
 0x128   :  { %v209_v5 = vadd.f32 %v567_v47, %v208_v0  ;;  %574 = vpow2.f32 %v421_v63 }
 0x129   :  { %576 = vpow2.f32 %v427_v1  ;;  %v417_v7 = vsub.f32 %v321_v29, %v415_v4  ;;  %v423_v8 = vsub.f32 %v365_v36, %v415_v4  ;;  %v429_v9 = vsub.f32 %v409_v2, %v415_v4 }
 0x12a   :  { %v213_v10 = vsel %vm212_vm4, %v567_v47, %v209_v5  ;;  %578 = vpow2.f32 %v433_v3 }
 0x12b   :  { %v569_v11 = vpop.eup %568  ;;  %v218_v12 = vsel %vm215_vm5, %v217_v6, %v213_v10  ;;  %v419_v13 = vmul.f32 1.442695, %v417_v7  ;;  %v425_v14 = vmul.f32 1.442695, %v423_v8  ;;  %v431_v22 = vmul.f32 1.442695, %v429_v9 }
 0x12c   :  { %v571_v15 = vpop.eup %570  ;;  %v235_v19 = vmul.f32 %v561_v30, %v218_v12  ;;  %v239_v20 = vmul.f32 %v563_v34, %v218_v12  ;;  %v245_v21 = vmul.f32 %v565_v39, %v218_v12 }
 0x12d   :  { %v573_v23 = vpop.eup %572  ;;  %v202_v24 = vadd.f32 %v571_v15, %v569_v11  ;;  %580 = vpow2.f32 %v419_v13 }
 0x12e   :  { %v575_v25 = vpop.eup %574  ;;  %v237_v26 = vmul.f32 %v235_v19, %v692_v16  ;;  %v241_v27 = vmul.f32 %v697_v17, %v239_v20  ;;  %582 = vpow2.f32 %v425_v14  ;;  %v247_v36 = vmul.f32 %v702_v18, %v245_v21 }
 0x12f   :  { %v577_v28 = vpop.eup %576  ;;  %v204_v29 = vadd.f32 %v573_v23, %v202_v24  ;;  %584 = vpow2.f32 %v431_v22 }
 0x130   :  { %v243_v35 = vadd.f32 %v241_v27, %v237_v26  ;;  %v436_v37 = vadd.f32 %v577_v28, %v575_v25  ;;  %v579_v30 = vpop.eup %578 }
 0x131   :  { %586 = vrcp.f32 %v204_v29  ;;  %v231_v48 = vand.u32 2147483648, %v204_v29  ;;  %v229_v51 = vand.u32 2147483647, %v204_v29  ;;  %vm225_vm7 = vweird.f32 %v204_v29 }
 0x132   :  { %v249_v34 = vadd.f32 %v247_v36, %v243_v35  ;;  %v438_v38 = vadd.f32 %v579_v30, %v436_v37 }
 0x133   :  { %v814_v39 = vpop.eup %580  ;;  %v232_v56 = vor.u32 1.1754944e-38, %v231_v48  ;;  %vm230_vm10 = vcmp.eq.f32.partialorder %v229_v51, 8.507059e+37 }
 0x134   :  { %v816_v40 = vpop.eup %582  ;;  %251 = vst.msk [vmem:[#allocation2] sm:$0xff] %vm21_vm0, %v249_v34  ;;  %588 = vrcp.f32 %v438_v38  ;;  %v465_v53 = vand.u32 2147483648, %v438_v38  ;;  %v463_v58 = vand.u32 2147483647, %v438_v38  ;;  %vm459_vm11 = vweird.f32 %v438_v38 }
 0x135   :  { %v435_v41 = vadd.f32 %v816_v40, %v814_v39  ;;  %v821_v42 = vpop.eup %584 }
 0x136   :  { %v466_v63 = vor.u32 1.1754944e-38, %v465_v53  ;;  %vm464_vm13 = vcmp.eq.f32.partialorder %v463_v58, 8.507059e+37 }
 0x137   :  { %v587_v43 = vpop.eup %586  ;;  %v437_v44 = vadd.f32 %v821_v42, %v435_v41 }
 0x138   :  { %v221_v45 = vmul.f32 %v587_v43, %v204_v29  ;;  %vm226_vm6 = vweird.f32 %v587_v43 }
 0x139   :  { %590 = vrcp.f32 %v437_v44  ;;  %vm227_vm8 = vmor %vm225_vm7, %vm226_vm6  ;;  %v448_v5 = vand.u32 2147483647, %v437_v44  ;;  %v450_v6 = vand.u32 2147483648, %v437_v44  ;;  %vm444_vm15 = vweird.f32 %v437_v44 }
 0x13a   :  { %v589_v46 = vpop.eup %588  ;;  %v222_v47 = vsub.f32 1.0, %v221_v45 }
 0x13b   :  { %v455_v49 = vmul.f32 %v589_v46, %v438_v38  ;;  %vm460_vm9 = vweird.f32 %v589_v46  ;;  %vm449_vm2 = vcmp.eq.f32.partialorder %v448_v5, 8.507059e+37 }
 0x13c   :  { %v223_v50 = vmul.f32 %v587_v43, %v222_v47  ;;  %vm461_vm12 = vmor %vm459_vm11, %vm460_vm9 }
 0x13d   :  { %v456_v52 = vsub.f32 1.0, %v455_v49 }
 0x13e   :  { %v224_v54 = vadd.f32 %v587_v43, %v223_v50 }
 0x13f   :  { %v591_v55 = vpop.eup %590  ;;  %v457_v57 = vmul.f32 %v589_v46, %v456_v52 }
 0x140   :  { %v228_v59 = vsel %vm227_vm8, %v587_v43, %v224_v54  ;;  %v440_v60 = vmul.f32 %v591_v55, %v437_v44  ;;  %vm445_vm14 = vweird.f32 %v591_v55 }
 0x141   :  { %v233_v61 = vsel %vm230_vm10, %v232_v56, %v228_v59  ;;  %v458_v62 = vadd.f32 %v589_v46, %v457_v57  ;;  %vm446_vm1 = vmor %vm444_vm15, %vm445_vm14 }
 0x142   :  { %v236_v0 = vmul.f32 %v569_v11, %v233_v61  ;;  %v240_v1 = vmul.f32 %v571_v15, %v233_v61  ;;  %v246_v2 = vmul.f32 %v573_v23, %v233_v61  ;;  %v441_v3 = vsub.f32 1.0, %v440_v60 }
 0x143   :  { %v462_v4 = vsel %vm461_vm12, %v589_v46, %v458_v62  ;;  %v451_v23 = vor.u32 1.1754944e-38, %v450_v6 }
 0x144   :  { %v238_v7 = vmul.f32 %v236_v0, %v751_v31  ;;  %v242_v8 = vmul.f32 %v756_v32, %v240_v1  ;;  %v467_v9 = vsel %vm464_vm13, %v466_v63, %v462_v4  ;;  %v442_v14 = vmul.f32 %v591_v55, %v441_v3 }
 0x145   :  { %v470_v10 = vmul.f32 %v575_v25, %v467_v9  ;;  %v474_v12 = vmul.f32 %v577_v28, %v467_v9  ;;  %v480_v13 = vmul.f32 %v579_v30, %v467_v9  ;;  %v248_v11 = vmul.f32 %v761_v33, %v246_v2 }
 0x146   :  { %v244_v19 = vadd.f32 %v242_v8, %v238_v7  ;;  %v443_v21 = vadd.f32 %v591_v55, %v442_v14 }
 0x147   :  { %v472_v15 = vmul.f32 %v470_v10, %v751_v31  ;;  %v476_v20 = vmul.f32 %v756_v32, %v474_v12  ;;  %v482_v26 = vmul.f32 %v761_v33, %v480_v13 }
 0x148   :  { %v250_v22 = vadd.f32 %v248_v11, %v244_v19  ;;  %v447_v27 = vsel %vm446_vm1, %v591_v55, %v443_v21 }
 0x149   :  { %v478_v24 = vadd.f32 %v476_v20, %v472_v15  ;;  %v452_v25 = vsel %vm449_vm2, %v451_v23, %v447_v27 }
 0x14a   :  { %252 = vst.msk [vmem:[#allocation2 + $0x8] sm:$0xff] %vm21_vm0, %v250_v22  ;;  %v469_v29 = vmul.f32 %v814_v39, %v452_v25  ;;  %v473_v31 = vmul.f32 %v816_v40, %v452_v25  ;;  %v479_v32 = vmul.f32 %v821_v42, %v452_v25 }
 0x14b   :  { %v484_v28 = vadd.f32 %v482_v26, %v478_v24 }
 0x14c   :  { %v471_v35 = vmul.f32 %v469_v29, %v692_v16  ;;  %v475_v36 = vmul.f32 %v697_v17, %v473_v31  ;;  %v481_v37 = vmul.f32 %v702_v18, %v479_v32 }
 0x14d   :  { %487 = vst.msk [vmem:[#allocation2 + $0x18] sm:$0xff] %vm21_vm0, %v484_v28 }
 0x14e   :  { %v477_v33 = vadd.f32 %v475_v36, %v471_v35 }
 0x150   :  { %v483_v30 = vadd.f32 %v481_v37, %v477_v33 }
 0x152   :  { %486 = vst.msk [vmem:[#allocation2 + $0x10] sm:$0xff] %vm21_vm0, %v483_v30 }
 0x153   :  { %500 = dma.vmem_to_hbm [thread:$0]  %s493_s2, 512, %s495_s8, [#allocation3], %s619_s9, %s619_s9, %s620_s10  }
 0x154   :  { %616 = dma.done.wait [#allocation3], 512  }
 0x155   :  { %617 = vsyncadd [#allocation3], 4294966784 }
 0x156   :  { %505 = vsyncpa [#allocation3], 1 }

</bundles_post_ra>
